<compile_context>
chip_gen: v7x
topology: tpu7x:2x2x1
jax: 0.10.0
libtpu: 0.0.40
codegen_flags: <defaults>
</compile_context>

<pallas_src>
import functools

import jax
import jax.numpy as jnp
from jax.experimental import pallas as pl
from jax.experimental.pallas import tpu as pltpu

F_IN, H1, H2, N_ACT = 13, 48, 24, 3
PAD = 128  # lane width; hidden/output feature dims are zero-padded to this


def _round_up(x, m):
    return ((x + m - 1) // m) * m


def dqn_mlp_kernel(x_ref, w1_ref, b1_ref, w2_ref, w3_ref, o_ref):
    # Layer 1: narrow f32 matmul (K = 13) + bias.  b1 also sets lane H1 to 1.0 so that,
    # after ReLU, h1 carries a constant-1 "bias lane" that the folded b2/b3 rows in
    # w2/w3 multiply against (bias-add without extra inputs or VPU adds).
    x = x_ref[...]                                                        # (TILE_B, 13) f32
    h1 = jnp.dot(x, w1_ref[...], preferred_element_type=jnp.float32) + b1_ref[...]
    h1 = jnp.maximum(h1, 0.0).astype(jnp.bfloat16)                        # lane H1 == 1

    # Layers 2/3: full-tile bf16 MXU matmuls, f32 accumulation.
    h2 = jnp.dot(h1, w2_ref[...], preferred_element_type=jnp.float32)
    h2 = jnp.maximum(h2, 0.0).astype(jnp.bfloat16)                        # lane H2 == 1
    q = jnp.dot(h2, w3_ref[...], preferred_element_type=jnp.float32)

    o_ref[...] = q.astype(o_ref.dtype)                                    # lane-dense bf16 store


@functools.partial(jax.jit, static_argnames=("tile_b",))
def dqn_forward(x, prepared_params, *, tile_b=2048):
    """x: (B, 13) f32 observations. prepared_params: output of prepare_params.

    Returns (B, 3) f32 Q-values (matches the PyTorch module's forward)."""
    w1, b1, w2, w3 = prepared_params
    B = x.shape[0]

    B_pad = _round_up(B, 8)                       # pad batch only to the sublane multiple
    TILE_B = min(_round_up(tile_b, 8), B_pad)     # defensive 8-multiple; clamp to batch
    if B_pad != B:
        x = jnp.pad(x, ((0, B_pad - B), (0, 0)))

    grid = (pl.cdiv(B_pad, TILE_B),)              # partial last block allowed

    const_w = pl.BlockSpec((PAD, PAD), lambda i: (0, 0))   # VMEM-resident across grid steps

    out = pl.pallas_call(
        dqn_mlp_kernel,
        out_shape=jax.ShapeDtypeStruct((B_pad, PAD), jnp.bfloat16),
        grid=grid,
        in_specs=[
            pl.BlockSpec((TILE_B, F_IN), lambda i: (i, 0)),   # streamed narrow obs tile
            pl.BlockSpec((F_IN, PAD), lambda i: (0, 0)),      # w1 (f32, K=13)
            pl.BlockSpec((1, PAD), lambda i: (0, 0)),         # b1 + carrier seed
            const_w,                                          # w2 (bf16, b2 folded)
            const_w,                                          # w3 (bf16, b3 folded)
        ],
        out_specs=pl.BlockSpec((TILE_B, PAD), lambda i: (i, 0)),
        compiler_params=pltpu.CompilerParams(dimension_semantics=("parallel",)),
    )(x, w1, b1, w2, w3)

    # For parity with the PyTorch forward we return (B, 3) f32.  NOTE: memory-bound callers
    # should consume the padded bf16 slab directly (or fuse argmax) to skip this extra pass.
    return out[:B, :N_ACT].astype(jnp.float32)


# ---------------- parameter init (matches the PyTorch module) ----------------

def _kaiming_uniform_fan_out(key, fan_in, fan_out):
    # kaiming_uniform_(mode='fan_out', nonlinearity='relu'): bound = sqrt(6 / fan_out)
    bound = jnp.sqrt(2.0) * jnp.sqrt(3.0 / fan_out)
    return jax.random.uniform(key, (fan_in, fan_out), jnp.float32, -bound, bound)


def _linear_default_weight(key, fan_in, fan_out):
    # nn.Linear default: kaiming_uniform with a=sqrt(5) -> U(-1/sqrt(fan_in), 1/sqrt(fan_in))
    bound = 1.0 / jnp.sqrt(float(fan_in))
    return jax.random.uniform(key, (fan_in, fan_out), jnp.float32, -bound, bound)


def _linear_default_bias(key, fan_in, fan_out):
    bound = 1.0 / jnp.sqrt(float(fan_in))
    return jax.random.uniform(key, (1, fan_out), jnp.float32, -bound, bound)


def init_params(key, init_bias=0.0):
    k1, k2, k3, k4, k5 = jax.random.split(key, 5)
    w1 = _kaiming_uniform_fan_out(k1, F_IN, H1)
    b1 = _linear_default_bias(k2, F_IN, H1)
    w2 = _kaiming_uniform_fan_out(k3, H1, H2)
    b2 = _linear_default_bias(k4, H1, H2)
    w3 = _linear_default_weight(k5, H2, N_ACT)
    b3 = jnp.full((1, N_ACT), init_bias, jnp.float32)
    return (w1, b1, w2, b2, w3, b3)


def prepare_params(params):
    """Pad weights to lane-dense tiles and fold b2/b3 in via a constant-1 bias-carrier lane.

    Zero padding keeps the math exact: padded feature lanes multiply zero weight rows/cols.
    Lane H1 of h1 and lane H2 of h2 carry the constant 1 (seeded by b1p[0, H1] = 1, forwarded
    by w2p[H1, H2] = 1), so rows H1 of w2 and H2 of w3 act as the b2 / b3 bias adds."""
    w1, b1, w2, b2, w3, b3 = params

    # Layer 1: keep f32 (exact) — K=13 matmul is compute-trivial anyway.
    w1p = jnp.zeros((F_IN, PAD), jnp.float32).at[:, :H1].set(w1)
    b1p = (jnp.zeros((1, PAD), jnp.float32)
           .at[:, :H1].set(b1)
           .at[0, H1].set(1.0))                       # bias-carrier seed (survives ReLU)

    # Layers 2/3: bf16 MXU operands with biases folded into the carrier row.
    w2p = (jnp.zeros((PAD, PAD), jnp.float32)
           .at[:H1, :H2].set(w2)
           .at[H1, :H2].set(b2[0])                    # b2 via carrier lane
           .at[H1, H2].set(1.0)                       # forward carrier to lane H2
           ).astype(jnp.bfloat16)
    w3p = (jnp.zeros((PAD, PAD), jnp.float32)
           .at[:H2, :N_ACT].set(w3)
           .at[H2, :N_ACT].set(b3[0])                 # b3 via carrier lane
           ).astype(jnp.bfloat16)

    return (w1p, b1p, w2p, w3p)


def reference_forward(x, params):
    w1, b1, w2, b2, w3, b3 = params
    h1 = jnp.maximum(x @ w1 + b1, 0.0)
    h2 = jnp.maximum(h1 @ w2 + b2, 0.0)
    return h2 @ w3 + b3


# TODO(synk): the Adam optimizer / MSELoss / device plumbing in the PyTorch module are
# training-side code with no Pallas equivalent; only the forward pass is kernelized.

if __name__ == "__main__":
    key = jax.random.PRNGKey(0)
    k_obs, k_params = jax.random.split(key)

    params = init_params(k_params, init_bias=0.1)
    prepped = prepare_params(params)

    # Small batch of observations (single grid step, no batch padding needed).
    B = 8
    observation = jax.random.normal(k_obs, (B, F_IN), dtype=jnp.float32)
    q_values = jax.block_until_ready(dqn_forward(observation, prepped))
    q_ref = reference_forward(observation, params)
    assert q_values.shape == (B, N_ACT)
    # bf16 MXU operands / bf16 output -> loosen tolerance vs the f32 reference.
    assert jnp.allclose(q_values, q_ref, atol=5e-2, rtol=5e-2)

    # Odd batch with a multi-step grid and a partial last block (exercises the cdiv
    # tiling path plus the row-padding-to-multiple-of-8 path).
    B2 = 300
    observation2 = jax.random.normal(jax.random.PRNGKey(1), (B2, F_IN), dtype=jnp.float32)
    q2 = jax.block_until_ready(dqn_forward(observation2, prepped, tile_b=64))
    q2_ref = reference_forward(observation2, params)
    assert q2.shape == (B2, N_ACT)
    assert jnp.allclose(q2, q2_ref, atol=5e-2, rtol=5e-2)

    print("KERNEL_OK")
</pallas_src>

<mosaic_0001>
module attributes {stable_mosaic.version = 11 : i64} {
  func.func @dqn_mlp_kernel(%arg0: i32, %arg1: memref<8x13xf32, #tpu.memory_space<vmem>>, %arg2: memref<13x128xf32, #tpu.memory_space<vmem>>, %arg3: memref<1x128xf32, #tpu.memory_space<vmem>>, %arg4: memref<128x128xbf16, #tpu.memory_space<vmem>>, %arg5: memref<128x128xbf16, #tpu.memory_space<vmem>>, %arg6: memref<8x128xbf16, #tpu.memory_space<vmem>>) attributes {dimension_semantics = [#tpu.dimension_semantics<parallel>], iteration_bounds = array<i64: 1>, scalar_prefetch = 0 : i64, scratch_operands = 0 : i64, tpu.core_type = #tpu.core_type<tc>, window_params = [{transform_indices = @transform_0, window_bounds = array<i64: 8, 13>}, {pipeline_mode = #tpu.pipeline_mode<synchronous>, transform_indices = @transform_1, window_bounds = array<i64: 13, 128>}, {pipeline_mode = #tpu.pipeline_mode<synchronous>, transform_indices = @transform_2, window_bounds = array<i64: 1, 128>}, {pipeline_mode = #tpu.pipeline_mode<synchronous>, transform_indices = @transform_3, window_bounds = array<i64: 128, 128>}, {pipeline_mode = #tpu.pipeline_mode<synchronous>, transform_indices = @transform_4, window_bounds = array<i64: 128, 128>}, {transform_indices = @transform_5, window_bounds = array<i64: 8, 128>}]} {
    %c0 = arith.constant 0 : index
    %c0_0 = arith.constant 0 : index
    %0 = vector.load %arg1[%c0, %c0_0] : memref<8x13xf32, #tpu.memory_space<vmem>>, vector<8x13xf32>
    %c0_1 = arith.constant 0 : index
    %c0_2 = arith.constant 0 : index
    %1 = vector.load %arg2[%c0_1, %c0_2] : memref<13x128xf32, #tpu.memory_space<vmem>>, vector<13x128xf32>
    %cst = arith.constant dense<0.000000e+00> : vector<8x128xf32>
    %2 = tpu.matmul %0, %1, %cst {dimension_numbers = #tpu.dot_dimension_numbers<[1], [0], [0], [1], [0, 0, 1, 1], [], []>} : vector<8x13xf32>, vector<13x128xf32>, vector<8x128xf32> -> vector<8x128xf32>
    %c0_3 = arith.constant 0 : index
    %c0_4 = arith.constant 0 : index
    %3 = vector.load %arg3[%c0_3, %c0_4] : memref<1x128xf32, #tpu.memory_space<vmem>>, vector<1x128xf32>
    %4 = vector.broadcast %3 : vector<1x128xf32> to vector<8x128xf32>
    %5 = arith.addf %2, %4 : vector<8x128xf32>
    %cst_5 = arith.constant 0.000000e+00 : f32
    %6 = vector.broadcast %cst_5 : f32 to vector<8x128xf32>
    %7 = arith.maximumf %5, %6 : vector<8x128xf32>
    %8 = arith.truncf %7 : vector<8x128xf32> to vector<8x128xbf16>
    %c0_6 = arith.constant 0 : index
    %c0_7 = arith.constant 0 : index
    %9 = vector.load %arg4[%c0_6, %c0_7] : memref<128x128xbf16, #tpu.memory_space<vmem>>, vector<128x128xbf16>
    %cst_8 = arith.constant dense<0.000000e+00> : vector<8x128xf32>
    %10 = tpu.matmul %8, %9, %cst_8 {dimension_numbers = #tpu.dot_dimension_numbers<[1], [0], [0], [1], [0, 0, 1, 1], [], []>} : vector<8x128xbf16>, vector<128x128xbf16>, vector<8x128xf32> -> vector<8x128xf32>
    %cst_9 = arith.constant 0.000000e+00 : f32
    %11 = vector.broadcast %cst_9 : f32 to vector<8x128xf32>
    %12 = arith.maximumf %10, %11 : vector<8x128xf32>
    %13 = arith.truncf %12 : vector<8x128xf32> to vector<8x128xbf16>
    %c0_10 = arith.constant 0 : index
    %c0_11 = arith.constant 0 : index
    %14 = vector.load %arg5[%c0_10, %c0_11] : memref<128x128xbf16, #tpu.memory_space<vmem>>, vector<128x128xbf16>
    %cst_12 = arith.constant dense<0.000000e+00> : vector<8x128xf32>
    %15 = tpu.matmul %13, %14, %cst_12 {dimension_numbers = #tpu.dot_dimension_numbers<[1], [0], [0], [1], [0, 0, 1, 1], [], []>} : vector<8x128xbf16>, vector<128x128xbf16>, vector<8x128xf32> -> vector<8x128xf32>
    %16 = arith.truncf %15 : vector<8x128xf32> to vector<8x128xbf16>
    %c0_13 = arith.constant 0 : index
    %c0_14 = arith.constant 0 : index
    %17 = vector.load %arg6[%c0_13, %c0_14] : memref<8x128xbf16, #tpu.memory_space<vmem>>, vector<8x128xbf16>
    tpu.vector_store %arg6[%c0_13, %c0_14], %16 {strides = array<i32>} : memref<8x128xbf16, #tpu.memory_space<vmem>>, vector<8x128xbf16>,
    return
  }
  func.func @transform_0(%arg0: i32) -> (i32, i32) {
    %c0_i32 = arith.constant 0 : i32
    %c0_i32_0 = arith.constant 0 : i32
    return %arg0, %c0_i32 : i32, i32
  }
  func.func @transform_1(%arg0: i32) -> (i32, i32) {
    %c0_i32 = arith.constant 0 : i32
    %c0_i32_0 = arith.constant 0 : i32
    %c0_i32_1 = arith.constant 0 : i32
    return %c0_i32, %c0_i32_0 : i32, i32
  }
  func.func @transform_2(%arg0: i32) -> (i32, i32) {
    %c0_i32 = arith.constant 0 : i32
    %c0_i32_0 = arith.constant 0 : i32
    %c0_i32_1 = arith.constant 0 : i32
    return %c0_i32, %c0_i32_0 : i32, i32
  }
  func.func @transform_3(%arg0: i32) -> (i32, i32) {
    %c0_i32 = arith.constant 0 : i32
    %c0_i32_0 = arith.constant 0 : i32
    %c0_i32_1 = arith.constant 0 : i32
    return %c0_i32, %c0_i32_0 : i32, i32
  }
  func.func @transform_4(%arg0: i32) -> (i32, i32) {
    %c0_i32 = arith.constant 0 : i32
    %c0_i32_0 = arith.constant 0 : i32
    %c0_i32_1 = arith.constant 0 : i32
    return %c0_i32, %c0_i32_0 : i32, i32
  }
  func.func @transform_5(%arg0: i32) -> (i32, i32) {
    %c0_i32 = arith.constant 0 : i32
    %c0_i32_0 = arith.constant 0 : i32
    return %arg0, %c0_i32 : i32, i32
  }
}

</mosaic_0001>

<bundles_post_ra>
// kernel: dqn_forward.1
= control target key start
LH: loop header
LB: loop body
LE: loop exit
PB: predicated region body
PF: predicated region fallthrough
CT: control target
= control target key end

     0   :  { %10 = vsyncpa [#allocation3], 0  ;;  %s695_s0 = inlined_call_operand.hbm [shape: f32[8,13], index: 0, kind: input, shape index: {}]   ;;  %s696_s1 = inlined_call_operand.hbm [shape: f32[13,128], index: 1, kind: input, shape index: {}]   ;;  %s697_s2 = inlined_call_operand.vmem [shape: f32[1,128], index: 2, kind: input, shape index: {}]   ;;  %s698_s3 = inlined_call_operand.hbm [shape: bf16[128,128], index: 3, kind: input, shape index: {}]   ;;  %s699_s4 = inlined_call_operand.hbm [shape: bf16[128,128], index: 4, kind: input, shape index: {}]   ;;  %s700_s5 = inlined_call_operand.vmem [shape: bf16[8,128], index: 5, kind: output, shape index: {}]  }
   0x1   :  { %11 = vsyncpa [#allocation5], 0 }
   0x2   :  { %12 = vsyncpa [#allocation8], 0  ;;  %s596_s18 = smov [#allocation4]   ;;  %s502_s22 = scalar_lea.hbm %s696_s1, 256 }
   0x3   :  { %s28_s19 = sshll.u32 %s596_s18, 4  ;;  %p503_p0 = scmp.ne.s32.totalorder %s696_s1, %s502_s22  ;;  %s29_s19 = int_to_ptr.vmem [resolvable:$true] %s28_s19 }
   0x4   :  { %p506_p1 = scmp.lt.u32.totalorder %s502_s22, %s696_s1 }
   0x6   :  { %p508_p2 = pnand %p506_p1, %p503_p0 }
   0x8   :  { %511 = shalt.err (!%p508_p2)
}
   0x9   :  { %s512_s27 = scalar_lea.vmem %s29_s19, 256  ;;  %p517_p4 = scmp.lt.s32.totalorder %s29_s19, %s29_s19 }
   0xa   :  { %p513_p3 = scmp.ne.s32.totalorder %s29_s19, %s512_s27  ;;  %p518_p5 = scmp.lt.s32.totalorder %s512_s27, %s512_s27 }
   0xc   :  { %p519_p6 = por %p518_p5, %p517_p4 }
   0xe   :  { %p520_p7 = pnand %p519_p6, %p513_p3 }
  0x10   :  { %523 = shalt.err (!%p520_p7)
}
  0x11   :  { %s597_s28 = smov 128   ;;  %s598_s29 = smov 8  }
  0x12   :  { %34 = dma.hbm_to_vmem [thread:$0]  %s696_s1, 256, %s29_s19, [#allocation5], %s597_s28, %s597_s28, %s598_s29  }
  0x13   :  { %s599_s7 = smov [#allocation2]   ;;  %s600_s9 = smov [#allocation6]  }
  0x14   :  { %s19_s8 = sshll.u32 %s599_s7, 4  ;;  %s42_s10 = sshll.u32 %s600_s9, 4  ;;  %s20_s8 = int_to_ptr.vmem [resolvable:$true] %s19_s8  ;;  %s43_s10 = int_to_ptr.vmem [resolvable:$true] %s42_s10 }
  0x15   :  { %s524_s13 = scalar_lea.hbm %s695_s0, 128 }
  0x16   :  { %p525_p8 = scmp.ne.s32.totalorder %s695_s0, %s524_s13  ;;  %p528_p9 = scmp.lt.u32.totalorder %s524_s13, %s695_s0 }
  0x18   :  { %p530_p10 = pnand %p528_p9, %p525_p8 }
  0x1a   :  { %533 = shalt.err (!%p530_p10)
}
  0x1b   :  { %s534_s1 = scalar_lea.vmem %s20_s8, 128  ;;  %p539_p12 = scmp.lt.s32.totalorder %s20_s8, %s20_s8 }
  0x1c   :  { %p535_p11 = scmp.ne.s32.totalorder %s20_s8, %s534_s1  ;;  %p540_p13 = scmp.lt.s32.totalorder %s534_s1, %s534_s1 }
  0x1e   :  { %p541_p0 = por %p540_p13, %p539_p12 }
  0x20   :  { %p542_p1 = pnand %p541_p0, %p535_p11 }
  0x22   :  { %545 = shalt.err (!%p542_p1)
}
  0x23   :  { %22 = dma.hbm_to_vmem [thread:$0]  %s695_s0, 128, %s20_s8, [#allocation3]  }
  0x24   :  { %s546_s22 = scalar_lea.hbm %s698_s3, 1024 }
  0x25   :  { %p547_p2 = scmp.ne.s32.totalorder %s698_s3, %s546_s22  ;;  %p550_p3 = scmp.lt.u32.totalorder %s546_s22, %s698_s3 }
  0x27   :  { %p552_p4 = pnand %p550_p3, %p547_p2 }
  0x29   :  { %555 = shalt.err (!%p552_p4)
}
  0x2a   :  { %s556_s27 = scalar_lea.vmem %s43_s10, 1024  ;;  %p561_p6 = scmp.lt.s32.totalorder %s43_s10, %s43_s10 }
  0x2b   :  { %p557_p5 = scmp.ne.s32.totalorder %s43_s10, %s556_s27  ;;  %p562_p7 = scmp.lt.s32.totalorder %s556_s27, %s556_s27 }
  0x2d   :  { %p563_p8 = por %p562_p7, %p561_p6 }
  0x2f   :  { %p564_p9 = pnand %p563_p8, %p557_p5 }
  0x31   :  { %567 = shalt.err (!%p564_p9)
}
  0x32   :  { %s601_s0 = smov 64   ;;  %s602_s28 = smov 4  }
  0x33   :  { %48 = dma.hbm_to_vmem [thread:$0]  %s698_s3, 1024, %s43_s10, [#allocation5], %s601_s0, %s601_s0, %s602_s28  }
  0x34   :  { %s603_s6 = smov [#allocation7]   ;;  %s568_s11 = scalar_lea.hbm %s699_s4, 1024 }
  0x35   :  { %s54_s7 = sshll.u32 %s603_s6, 4  ;;  %p569_p10 = scmp.ne.s32.totalorder %s699_s4, %s568_s11  ;;  %s55_s7 = int_to_ptr.vmem [resolvable:$true] %s54_s7 }
  0x36   :  { %p572_p11 = scmp.lt.u32.totalorder %s568_s11, %s699_s4 }
  0x38   :  { %p574_p12 = pnand %p572_p11, %p569_p10 }
  0x3a   :  { %577 = shalt.err (!%p574_p12)
}
  0x3b   :  { %s578_s16 = scalar_lea.vmem %s55_s7, 1024  ;;  %p583_p0 = scmp.lt.s32.totalorder %s55_s7, %s55_s7 }
  0x3c   :  { %p579_p13 = scmp.ne.s32.totalorder %s55_s7, %s578_s16  ;;  %p584_p1 = scmp.lt.s32.totalorder %s578_s16, %s578_s16 }
  0x3e   :  { %p585_p2 = por %p584_p1, %p583_p0 }
  0x40   :  { %p586_p3 = pnand %p585_p2, %p579_p13 }
  0x42   :  { %589 = shalt.err (!%p586_p3)
}
  0x43   :  { %60 = dma.hbm_to_vmem [thread:$0]  %s699_s4, 1024, %s55_s7, [#allocation8], %s601_s0, %s601_s0, %s602_s28  }
  0x44   :  { %590 = dma.done.wait [#allocation3], 128  }
  0x45   :  { %591 = vsyncadd [#allocation3], 4294967168 }
  0x46   :  { %592 = dma.done.wait [#allocation5], 1280  }
  0x47   :  { %593 = vsyncadd [#allocation5], 4294966016 }
  0x48   :  { %594 = dma.done.wait [#allocation8], 1024  }
  0x49   :  { %595 = vsyncadd [#allocation8], 4294966272  ;;  %v604_v0 = vmov 0.0|0.0   ;;  %vm605_vm0 = vmmov 0   ;;  %v606_v1 = vmov 0.0   ;;  %vm88_vm1 = vcmask 1044480  }
  0x4a   :  { %470 = vmatprep.subr.bf16.mxu0 %v604_v0  ;;  %427 = vmatprep.mubr.msk.f32.mxu0 %vm605_vm0, %v606_v1  ;;  %v75_v2 = vld [vmem:[#allocation4] sm:$0xff]  ;;  %v76_v3 = vld [vmem:[#allocation4 + $0x8] sm:$0x1f]  ;;  %vm607_vm2 = vmmov 1   ;;  %v486_v5 = vld [vmem:[#allocation6] sm:$0xff]   ;;  %vm84_vm4 = vcmask 105472  }
  0x4b   :  { %430 = vmatprep.subr.bf16.mxu1 %v606_v1  ;;  %446 = vmatprep.mubr.msk.bf16.mxu1 %vm605_vm0, %v606_v1  ;;  %vm472_vm3 = vmpackc.low %vm88_vm1, %vm607_vm2  ;;  %v471_v4 = vpack.c.bf16 %v76_v3, %v75_v2  ;;  %v74_v6 = vld [vmem:[#allocation2] sm:$0xff]  ;;  %v488_v8 = vld [vmem:[#allocation6 + $0x10] sm:$0xff]  }
  0x4c   :  { %431 = vmatpush3.bf16.msra.mxu1 %v486_v5  ;;  %v487_v7 = vld [vmem:[#allocation6 + $0x8] sm:$0xff]   ;;  %v489_v9 = vld [vmem:[#allocation6 + $0x18] sm:$0xff]   ;;  %v490_v10 = vld [vmem:[#allocation6 + $0x20] sm:$0xff]  }
  0x4d   :  { %473 = vmatpush3.bf16.msk.msra.mxu0 %vm472_vm3, %v471_v4  ;;  %432 = vmatprep.subr.bf16.mxu1 %v606_v1  ;;  %v491_v11 = vld [vmem:[#allocation6 + $0x28] sm:$0xff]   ;;  %v492_v12 = vld [vmem:[#allocation6 + $0x30] sm:$0xff]   ;;  %v493_v13 = vld [vmem:[#allocation6 + $0x38] sm:$0xff]  }
  0x4e   :  { %450 = vmatprep.subr.bf16.mxu0 %v606_v1  ;;  %v494_v14 = vld [vmem:[#allocation7] sm:$0xff]   ;;  %v495_v15 = vld [vmem:[#allocation7 + $0x8] sm:$0xff]   ;;  %v496_v16 = vld [vmem:[#allocation7 + $0x10] sm:$0xff]  }
  0x4f   :  { %v497_v17 = vld [vmem:[#allocation7 + $0x18] sm:$0xff]   ;;  %v498_v18 = vld [vmem:[#allocation7 + $0x20] sm:$0xff]   ;;  %v499_v19 = vld [vmem:[#allocation7 + $0x28] sm:$0xff]  }
  0x50   :  { %428 = vmatmul.mubr.msk.f32.vlgmr.msra.gmra.mrb[0].mxu0 %vm84_vm4, %v74_v6  ;;  %433 = vmatpush3.bf16.msra.mxu1 %v487_v7  ;;  %v500_v20 = vld [vmem:[#allocation7 + $0x30] sm:$0xff]   ;;  %v383_v21 = vld [vmem:[%s697_s2] ss:$0 sm:$0xff]  ;;  %v501_v27 = vld [vmem:[#allocation7 + $0x38] sm:$0xff]  }
  0x51   :  { %466 = vmatprep.mubr.msk.bf16.mxu0 %vm605_vm0, %v606_v1  ;;  %434 = vmatprep.subr.bf16.mxu1 %v606_v1 }
  0x52   :  { %451 = vmatpush3.bf16.msra.mxu0 %v494_v14 }
  0x53   :  { %452 = vmatprep.subr.bf16.mxu0 %v606_v1 }
  0x54   :  { %435 = vmatpush3.bf16.msra.mxu1 %v488_v8 }
  0x55   :  { %436 = vmatprep.subr.bf16.mxu1 %v606_v1 }
  0x56   :  { %453 = vmatpush3.bf16.msra.mxu0 %v495_v15 }
  0x57   :  { %454 = vmatprep.subr.bf16.mxu0 %v606_v1 }
  0x58   :  { %437 = vmatpush3.bf16.msra.mxu1 %v489_v9 }
  0x59   :  { %438 = vmatprep.subr.bf16.mxu1 %v606_v1 }
  0x5a   :  { %455 = vmatpush3.bf16.msra.mxu0 %v496_v16 }
  0x5b   :  { %456 = vmatprep.subr.bf16.mxu0 %v606_v1 }
  0x5c   :  { %439 = vmatpush3.bf16.msra.mxu1 %v490_v10 }
  0x5d   :  { %440 = vmatprep.subr.bf16.mxu1 %v606_v1 }
  0x5e   :  { %457 = vmatpush3.bf16.msra.mxu0 %v497_v17 }
  0x5f   :  { %458 = vmatprep.subr.bf16.mxu0 %v606_v1 }
  0x60   :  { %441 = vmatpush3.bf16.msra.mxu1 %v491_v11 }
  0x61   :  { %442 = vmatprep.subr.bf16.mxu1 %v606_v1 }
  0x62   :  { %459 = vmatpush3.bf16.msra.mxu0 %v498_v18 }
  0x63   :  { %460 = vmatprep.subr.bf16.mxu0 %v606_v1 }
  0x64   :  { %443 = vmatpush3.bf16.msra.mxu1 %v492_v12 }
  0x65   :  { %444 = vmatprep.subr.bf16.mxu1 %v606_v1 }
  0x66   :  { %461 = vmatpush3.bf16.msra.mxu0 %v499_v19 }
  0x67   :  { %462 = vmatprep.subr.bf16.mxu0 %v606_v1 }
  0x68   :  { %445 = vmatpush3.bf16.msra.mxu1 %v493_v13 }
  0x6a   :  { %463 = vmatpush3.bf16.msra.mxu0 %v500_v20 }
  0x6b   :  { %464 = vmatprep.subr.bf16.mxu0 %v606_v1 }
  0x6e   :  { %465 = vmatpush3.bf16.msra.mxu0 %v501_v27 }
 0x123   :  { %v158_v22 = vpop.f32.mrb[0].mxu0 }
 0x124   :  { %v159_v23 = vadd.f32 %v383_v21, %v158_v22  ;;  %v429_v24 = vpop.f32.mrb[1].mxu0 }
 0x126   :  { %v162_v25 = vmax.f32 %v159_v23, 0.0 }
 0x128   :  { %v163_v26 = vpack.c.bf16 %v162_v25, %v162_v25 }
 0x12a   :  { %447 = vmatmul.mubr.bf16.vlgmr.msra.gmra.mrb[0].mxu1 %v163_v26 }
 0x1fd   :  { %v262_v28 = vpop.f32.mrb[0].mxu1 }
 0x1fe   :  { %v268_v29 = vmax.f32 %v262_v28, 0.0  ;;  %v448_v30 = vpop.f32.mrb[1].mxu1 }
 0x1ff   :  { %v265_v31 = vpop.f32.mrb[2].mxu1 }
 0x200   :  { %v269_v32 = vpack.c.bf16 %v268_v29, %v268_v29  ;;  %v449_v33 = vpop.f32.mrb[3].mxu1 }
 0x202   :  { %467 = vmatmul.mubr.bf16.vlgmr.msra.gmra.mrb[4].mxu0 %v269_v32 }
 0x2d5   :  { %v368_v34 = vpop.f32.mrb[4].mxu0 }
 0x2d6   :  { %v374_v35 = vpack.c.bf16 %v368_v34, %v368_v34  ;;  %v468_v36 = vpop.f32.mrb[5].mxu0 }
 0x2d7   :  { %v371_v37 = vpop.f32.mrb[6].mxu0 }
 0x2d8   :  { %375 = vst [vmem:[%s700_s5] sm:$0xf] %v374_v35  ;;  %v469_v38 = vpop.f32.mrb[7].mxu0 }
 0x2d9   :  { %380 = vsyncpa [#allocation3], 1 }
 0x2da   :  { %381 = vsyncpa [#allocation5], 1 }
 0x2db   :  { %382 = vsyncpa [#allocation8], 1 }

</bundles_post_ra>
